<compile_context>
chip_gen: v6e
topology: v6e:2x2x1
jax: 0.10.0
libtpu: 0.0.40
codegen_flags: <defaults>
</compile_context>

<pallas_src>
import functools

import jax
import jax.numpy as jnp
from jax import lax
from jax.experimental import pallas as pl
from jax.experimental.pallas import tpu as pltpu

C_IN = 3
HIDDEN = 128
C_OUT = 1
KH = KW = 3
C_PAD = 8                       # channels padded 3 -> 8 (ch 3 = ones, 4..7 = zeros)
K_TOTAL = KH * KW * C_PAD       # 72  (one MXU pass; K under-fill is irrelevant here)
LANE = 128
_TARGET_BAND_PX = 8192          # target output pixels per grid step


def _round_up(x, m):
    return (x + m - 1) // m * m


def _feature_net_kernel(x_ref, w1_ref, w2_ref, b2_ref, o_ref, patch_ref,
                        *, wp, out_len):
    """One grid step = one row-band of one image.

    x_ref     : (1, C_PAD, band_len)   padded+flattened image band (bf16/f32)
    w1_ref    : (HIDDEN, K_TOTAL)      folded conv1 weights (+bias column)
    w2_ref    : (C_OUT, HIDDEN)        1x1 conv2 weights
    b2_ref    : (C_OUT, 1)             conv2 bias (f32)
    o_ref     : (1, C_OUT, out_len)    lane-dense output band (f32)
    patch_ref : (K_TOTAL, out_len)     VMEM scratch for the im2col patch tile
    """
    # ---- in-kernel im2col: 9 statically shifted slices of the band ---------
    # Offset for tap (dy, dx) in flattened padded coords is dy*Wp + dx; channel
    # groups land at sublane offsets 8*k, so every scratch store is aligned.
    for k in range(KH * KW):
        dy, dx = divmod(k, KW)
        off = dy * wp + dx
        patch_ref[k * C_PAD:(k + 1) * C_PAD, :] = x_ref[0, :, off:off + out_len]

    # ---- conv1 as a single K=72 matmul, f32 MXU accumulation ---------------
    h = jnp.dot(w1_ref[...], patch_ref[...], preferred_element_type=jnp.float32)
    # conv1 bias already folded in via the ones channel -> only the ReLU here.
    h = jnp.maximum(h, 0.0).astype(w2_ref.dtype)

    # ---- 1x1 conv2: full K=128 contraction, lane-dense (1, out_len) result --
    out = jnp.dot(w2_ref[...], h, preferred_element_type=jnp.float32) + b2_ref[...]
    o_ref[0] = out.astype(o_ref.dtype)


def segmenter_parallel_forward(x_nchw, w1_oihw, b1, w2_oihw, b2,
                               *, compute_dtype=jnp.bfloat16,
                               band_px=_TARGET_BAND_PX):
    """Forward pass of segmenterParallel.

    x_nchw : (B, 3, H, W) f32       w1_oihw: (128, 3, 3, 3) f32   b1: (128,) f32
    w2_oihw: (1, 128, 1, 1) f32     b2: (1,) f32
    returns (B, 1, H, W) f32
    """
    B, C, H, W = x_nchw.shape
    assert C == C_IN
    Hp, Wp = H + 2, W + 2

    # ---- band geometry (whole output rows per band) -------------------------
    th = max(1, min(H, band_px // Wp))            # output rows per band
    nb = -(-H // th)                              # ceil(H / th)
    out_len = _round_up(th * Wp, LANE)            # lane-dense output tile length
    band_len = _round_up(out_len + 2 * Wp + 2, LANE)   # covers all 9 tap offsets
    flat_len = (nb - 1) * th * Wp + band_len

    # ---- input layout plumbing (cheap: ~16 B/pixel total) -------------------
    xc = x_nchw.astype(compute_dtype)                              # (B,3,H,W)
    ones = jnp.ones((B, 1, H, W), compute_dtype)                   # bias carrier
    zeros = jnp.zeros((B, C_PAD - C_IN - 1, H, W), compute_dtype)
    x8 = jnp.concatenate([xc, ones, zeros], axis=1)                # (B,8,H,W)
    x8 = jnp.pad(x8, ((0, 0), (0, 0), (1, 1), (1, 1)))             # (B,8,Hp,Wp)
    xf = x8.reshape(B, C_PAD, Hp * Wp)
    xf = jnp.pad(xf, ((0, 0), (0, 0), (0, flat_len - Hp * Wp)))    # (B,8,flat)
    if nb == 1:
        xb = xf[:, None]                                           # (B,1,8,band)
    else:
        xb = jnp.stack(
            [xf[:, :, t * th * Wp: t * th * Wp + band_len] for t in range(nb)],
            axis=1)
    xb = xb.reshape(B * nb, C_PAD, band_len)

    # ---- weight folding ------------------------------------------------------
    # OIHW -> (O, KH, KW, C_PAD); conv1 bias goes into the ones-channel column
    # of the center tap (ky=kx=1, c=3); flatten to (128, 72).
    w1_r = jnp.transpose(w1_oihw, (0, 2, 3, 1))                    # (128,3,3,3)
    w1_r = jnp.pad(w1_r, ((0, 0), (0, 0), (0, 0), (0, C_PAD - C_IN)))
    w1_r = w1_r.at[:, KH // 2, KW // 2, C_IN].set(b1)
    w1_t = w1_r.reshape(HIDDEN, K_TOTAL).astype(compute_dtype)
    w2_t = w2_oihw.reshape(C_OUT, HIDDEN).astype(compute_dtype)
    b2_t = b2.reshape(C_OUT, 1).astype(jnp.float32)

    kernel = functools.partial(_feature_net_kernel, wp=Wp, out_len=out_len)

    flops = 2 * B * H * W * (HIDDEN * KH * KW * C_IN + HIDDEN * C_OUT)
    bytes_accessed = (xb.size * xb.dtype.itemsize
                      + B * nb * out_len * 4
                      + w1_t.size * w1_t.dtype.itemsize
                      + w2_t.size * w2_t.dtype.itemsize
                      + b2_t.size * 4)

    out_flat = pl.pallas_call(
        kernel,
        out_shape=jax.ShapeDtypeStruct((B * nb, C_OUT, out_len), jnp.float32),
        grid_spec=pltpu.PrefetchScalarGridSpec(
            num_scalar_prefetch=0,
            grid=(B * nb,),
            in_specs=[
                pl.BlockSpec((1, C_PAD, band_len), lambda i: (i, 0, 0)),
                pl.BlockSpec((HIDDEN, K_TOTAL), lambda i: (0, 0)),
                pl.BlockSpec((C_OUT, HIDDEN), lambda i: (0, 0)),
                pl.BlockSpec((C_OUT, 1), lambda i: (0, 0)),
            ],
            out_specs=pl.BlockSpec((1, C_OUT, out_len), lambda i: (i, 0, 0)),
            scratch_shapes=[pltpu.VMEM((K_TOTAL, out_len), compute_dtype)],
        ),
        compiler_params=pltpu.CompilerParams(
            dimension_semantics=("parallel",),
        ),
        cost_estimate=pl.CostEstimate(
            flops=flops, transcendentals=0, bytes_accessed=bytes_accessed),
    )(xb, w1_t, w2_t, b2_t)

    # (B*nb, 1, out_len) -> (B, 1, H, W): drop lane padding / gutter columns /
    # padded rows introduced by the padded-flat coordinate system.
    out = out_flat.reshape(B, nb, out_len)[:, :, :th * Wp]
    out = out.reshape(B, nb * th, Wp)[:, :H, :W]
    return out[:, None, :, :]


def _reference_forward(x_nchw, w1_oihw, b1, w2_oihw, b2):
    """Pure-JAX (XLA conv) f32 reference using native PyTorch layouts."""
    y = lax.conv_general_dilated(
        x_nchw, w1_oihw, window_strides=(1, 1), padding="SAME",
        dimension_numbers=("NCHW", "OIHW", "NCHW"),
    ) + b1[None, :, None, None]
    y = jnp.maximum(y, 0.0)
    y = lax.conv_general_dilated(
        y, w2_oihw, window_strides=(1, 1), padding="SAME",
        dimension_numbers=("NCHW", "OIHW", "NCHW"),
    ) + b2[None, :, None, None]
    return y


if __name__ == "__main__":
    key = jax.random.PRNGKey(0)
    k_x, k_w1, k_b1, k_w2, k_b2 = jax.random.split(key, 5)

    B, H, W = 2, 16, 16
    x = jax.random.normal(k_x, (B, C_IN, H, W), dtype=jnp.float32)

    # PyTorch-native parameter layouts (OIHW weights, 1-D biases).  One shared
    # parameter set, mirroring the replicated module object in the ModuleList.
    w1 = jax.random.normal(k_w1, (HIDDEN, C_IN, KH, KW), dtype=jnp.float32) * 0.1
    b1 = jax.random.normal(k_b1, (HIDDEN,), dtype=jnp.float32) * 0.1
    w2 = jax.random.normal(k_w2, (C_OUT, HIDDEN, 1, 1), dtype=jnp.float32) * 0.1
    b2 = jax.random.normal(k_b2, (C_OUT,), dtype=jnp.float32) * 0.1

    fwd = jax.jit(segmenter_parallel_forward)
    out = jax.block_until_ready(fwd(x, w1, b1, w2, b2))
    ref = jax.block_until_ready(_reference_forward(x, w1, b1, w2, b2))

    assert out.shape == (B, C_OUT, H, W), out.shape
    # bf16 inputs/weights with f32 accumulation -> loosened tolerance (review).
    assert jnp.allclose(out, ref, atol=5e-2, rtol=5e-2), (
        f"mismatch vs JAX reference, max abs err "
        f"{float(jnp.max(jnp.abs(out - ref)))}")

    print("KERNEL_OK")
</pallas_src>

<mosaic_0001>
module attributes {stable_mosaic.version = 11 : i64} {
  func.func @_feature_net_kernel(%arg0: i32, %arg1: memref<1x8x512xbf16, #tpu.memory_space<vmem>>, %arg2: memref<128x72xbf16, #tpu.memory_space<vmem>>, %arg3: memref<1x128xbf16, #tpu.memory_space<vmem>>, %arg4: memref<1x1xf32, #tpu.memory_space<vmem>>, %arg5: memref<1x1x384xf32, #tpu.memory_space<vmem>>, %arg6: memref<72x384xbf16, #tpu.memory_space<vmem>>) attributes {dimension_semantics = [#tpu.dimension_semantics<parallel>], iteration_bounds = array<i64: 2>, scalar_prefetch = 0 : i64, scratch_operands = 1 : i64, tpu.core_type = #tpu.core_type<tc>, window_params = [{transform_indices = @transform_0, window_bounds = array<i64: 1, 8, 512>}, {pipeline_mode = #tpu.pipeline_mode<synchronous>, transform_indices = @transform_1, window_bounds = array<i64: 128, 72>}, {pipeline_mode = #tpu.pipeline_mode<synchronous>, transform_indices = @transform_2, window_bounds = array<i64: 1, 128>}, {pipeline_mode = #tpu.pipeline_mode<synchronous>, transform_indices = @transform_3, window_bounds = array<i64: 1, 1>}, {transform_indices = @transform_4, window_bounds = array<i64: 1, 1, 384>}]} {
    %c0 = arith.constant 0 : index
    %c0_0 = arith.constant 0 : index
    %c0_1 = arith.constant 0 : index
    %0 = vector.load %arg1[%c0, %c0_0, %c0_1] : memref<1x8x512xbf16, #tpu.memory_space<vmem>>, vector<1x8x384xbf16>
    %1 = vector.shape_cast %0 : vector<1x8x384xbf16> to vector<8x384xbf16>
    %c0_2 = arith.constant 0 : index
    %c0_3 = arith.constant 0 : index
    %2 = vector.load %arg6[%c0_2, %c0_3] : memref<72x384xbf16, #tpu.memory_space<vmem>>, vector<8x384xbf16>
    tpu.vector_store %arg6[%c0_2, %c0_3], %1 {strides = array<i32>} : memref<72x384xbf16, #tpu.memory_space<vmem>>, vector<8x384xbf16>,
    %c0_4 = arith.constant 0 : index
    %c0_5 = arith.constant 0 : index
    %c1 = arith.constant 1 : index
    %3 = vector.load %arg1[%c0_4, %c0_5, %c1] : memref<1x8x512xbf16, #tpu.memory_space<vmem>>, vector<1x8x384xbf16>
    %4 = vector.shape_cast %3 : vector<1x8x384xbf16> to vector<8x384xbf16>
    %c8 = arith.constant 8 : index
    %c0_6 = arith.constant 0 : index
    %5 = vector.load %arg6[%c8, %c0_6] : memref<72x384xbf16, #tpu.memory_space<vmem>>, vector<8x384xbf16>
    tpu.vector_store %arg6[%c8, %c0_6], %4 {strides = array<i32>} : memref<72x384xbf16, #tpu.memory_space<vmem>>, vector<8x384xbf16>,
    %c0_7 = arith.constant 0 : index
    %c0_8 = arith.constant 0 : index
    %c2 = arith.constant 2 : index
    %6 = vector.load %arg1[%c0_7, %c0_8, %c2] : memref<1x8x512xbf16, #tpu.memory_space<vmem>>, vector<1x8x384xbf16>
    %7 = vector.shape_cast %6 : vector<1x8x384xbf16> to vector<8x384xbf16>
    %c16 = arith.constant 16 : index
    %c0_9 = arith.constant 0 : index
    %8 = vector.load %arg6[%c16, %c0_9] : memref<72x384xbf16, #tpu.memory_space<vmem>>, vector<8x384xbf16>
    tpu.vector_store %arg6[%c16, %c0_9], %7 {strides = array<i32>} : memref<72x384xbf16, #tpu.memory_space<vmem>>, vector<8x384xbf16>,
    %c0_10 = arith.constant 0 : index
    %c0_11 = arith.constant 0 : index
    %c18 = arith.constant 18 : index
    %9 = vector.load %arg1[%c0_10, %c0_11, %c18] : memref<1x8x512xbf16, #tpu.memory_space<vmem>>, vector<1x8x384xbf16>
    %10 = vector.shape_cast %9 : vector<1x8x384xbf16> to vector<8x384xbf16>
    %c24 = arith.constant 24 : index
    %c0_12 = arith.constant 0 : index
    %11 = vector.load %arg6[%c24, %c0_12] : memref<72x384xbf16, #tpu.memory_space<vmem>>, vector<8x384xbf16>
    tpu.vector_store %arg6[%c24, %c0_12], %10 {strides = array<i32>} : memref<72x384xbf16, #tpu.memory_space<vmem>>, vector<8x384xbf16>,
    %c0_13 = arith.constant 0 : index
    %c0_14 = arith.constant 0 : index
    %c19 = arith.constant 19 : index
    %12 = vector.load %arg1[%c0_13, %c0_14, %c19] : memref<1x8x512xbf16, #tpu.memory_space<vmem>>, vector<1x8x384xbf16>
    %13 = vector.shape_cast %12 : vector<1x8x384xbf16> to vector<8x384xbf16>
    %c32 = arith.constant 32 : index
    %c0_15 = arith.constant 0 : index
    %14 = vector.load %arg6[%c32, %c0_15] : memref<72x384xbf16, #tpu.memory_space<vmem>>, vector<8x384xbf16>
    tpu.vector_store %arg6[%c32, %c0_15], %13 {strides = array<i32>} : memref<72x384xbf16, #tpu.memory_space<vmem>>, vector<8x384xbf16>,
    %c0_16 = arith.constant 0 : index
    %c0_17 = arith.constant 0 : index
    %c20 = arith.constant 20 : index
    %15 = vector.load %arg1[%c0_16, %c0_17, %c20] : memref<1x8x512xbf16, #tpu.memory_space<vmem>>, vector<1x8x384xbf16>
    %16 = vector.shape_cast %15 : vector<1x8x384xbf16> to vector<8x384xbf16>
    %c40 = arith.constant 40 : index
    %c0_18 = arith.constant 0 : index
    %17 = vector.load %arg6[%c40, %c0_18] : memref<72x384xbf16, #tpu.memory_space<vmem>>, vector<8x384xbf16>
    tpu.vector_store %arg6[%c40, %c0_18], %16 {strides = array<i32>} : memref<72x384xbf16, #tpu.memory_space<vmem>>, vector<8x384xbf16>,
    %c0_19 = arith.constant 0 : index
    %c0_20 = arith.constant 0 : index
    %c36 = arith.constant 36 : index
    %18 = vector.load %arg1[%c0_19, %c0_20, %c36] : memref<1x8x512xbf16, #tpu.memory_space<vmem>>, vector<1x8x384xbf16>
    %19 = vector.shape_cast %18 : vector<1x8x384xbf16> to vector<8x384xbf16>
    %c48 = arith.constant 48 : index
    %c0_21 = arith.constant 0 : index
    %20 = vector.load %arg6[%c48, %c0_21] : memref<72x384xbf16, #tpu.memory_space<vmem>>, vector<8x384xbf16>
    tpu.vector_store %arg6[%c48, %c0_21], %19 {strides = array<i32>} : memref<72x384xbf16, #tpu.memory_space<vmem>>, vector<8x384xbf16>,
    %c0_22 = arith.constant 0 : index
    %c0_23 = arith.constant 0 : index
    %c37 = arith.constant 37 : index
    %21 = vector.load %arg1[%c0_22, %c0_23, %c37] : memref<1x8x512xbf16, #tpu.memory_space<vmem>>, vector<1x8x384xbf16>
    %22 = vector.shape_cast %21 : vector<1x8x384xbf16> to vector<8x384xbf16>
    %c56 = arith.constant 56 : index
    %c0_24 = arith.constant 0 : index
    %23 = vector.load %arg6[%c56, %c0_24] : memref<72x384xbf16, #tpu.memory_space<vmem>>, vector<8x384xbf16>
    tpu.vector_store %arg6[%c56, %c0_24], %22 {strides = array<i32>} : memref<72x384xbf16, #tpu.memory_space<vmem>>, vector<8x384xbf16>,
    %c0_25 = arith.constant 0 : index
    %c0_26 = arith.constant 0 : index
    %c38 = arith.constant 38 : index
    %24 = vector.load %arg1[%c0_25, %c0_26, %c38] : memref<1x8x512xbf16, #tpu.memory_space<vmem>>, vector<1x8x384xbf16>
    %25 = vector.shape_cast %24 : vector<1x8x384xbf16> to vector<8x384xbf16>
    %c64 = arith.constant 64 : index
    %c0_27 = arith.constant 0 : index
    %26 = vector.load %arg6[%c64, %c0_27] : memref<72x384xbf16, #tpu.memory_space<vmem>>, vector<8x384xbf16>
    tpu.vector_store %arg6[%c64, %c0_27], %25 {strides = array<i32>} : memref<72x384xbf16, #tpu.memory_space<vmem>>, vector<8x384xbf16>,
    %c0_28 = arith.constant 0 : index
    %c0_29 = arith.constant 0 : index
    %27 = vector.load %arg2[%c0_28, %c0_29] : memref<128x72xbf16, #tpu.memory_space<vmem>>, vector<128x72xbf16>
    %c0_30 = arith.constant 0 : index
    %c0_31 = arith.constant 0 : index
    %28 = vector.load %arg6[%c0_30, %c0_31] : memref<72x384xbf16, #tpu.memory_space<vmem>>, vector<72x384xbf16>
    %cst = arith.constant dense<0.000000e+00> : vector<128x384xf32>
    %29 = tpu.matmul %27, %28, %cst {dimension_numbers = #tpu.dot_dimension_numbers<[1], [0], [0], [1], [0, 0, 1, 1], [], []>} : vector<128x72xbf16>, vector<72x384xbf16>, vector<128x384xf32> -> vector<128x384xf32>
    %cst_32 = arith.constant 0.000000e+00 : f32
    %30 = vector.broadcast %cst_32 : f32 to vector<128x384xf32>
    %31 = arith.maximumf %29, %30 : vector<128x384xf32>
    %32 = arith.truncf %31 : vector<128x384xf32> to vector<128x384xbf16>
    %c0_33 = arith.constant 0 : index
    %c0_34 = arith.constant 0 : index
    %33 = vector.load %arg3[%c0_33, %c0_34] : memref<1x128xbf16, #tpu.memory_space<vmem>>, vector<1x128xbf16>
    %cst_35 = arith.constant dense<0.000000e+00> : vector<1x384xf32>
    %34 = tpu.matmul %33, %32, %cst_35 {dimension_numbers = #tpu.dot_dimension_numbers<[1], [0], [0], [1], [0, 0, 1, 1], [], []>} : vector<1x128xbf16>, vector<128x384xbf16>, vector<1x384xf32> -> vector<1x384xf32>
    %c0_36 = arith.constant 0 : index
    %c0_37 = arith.constant 0 : index
    %35 = vector.load %arg4[%c0_36, %c0_37] : memref<1x1xf32, #tpu.memory_space<vmem>>, vector<1x1xf32>
    %36 = vector.broadcast %35 : vector<1x1xf32> to vector<1x384xf32>
    %37 = arith.addf %34, %36 : vector<1x384xf32>
    %c0_38 = arith.constant 0 : index
    %c0_39 = arith.constant 0 : index
    %c0_40 = arith.constant 0 : index
    %38 = vector.load %arg5[%c0_38, %c0_39, %c0_40] : memref<1x1x384xf32, #tpu.memory_space<vmem>>, vector<1x1x384xf32>
    %39 = vector.shape_cast %38 : vector<1x1x384xf32> to vector<1x384xf32>
    %40 = vector.shape_cast %37 : vector<1x384xf32> to vector<1x1x384xf32>
    tpu.vector_store %arg5[%c0_38, %c0_39, %c0_40], %40 {strides = array<i32>} : memref<1x1x384xf32, #tpu.memory_space<vmem>>, vector<1x1x384xf32>,
    return
  }
  func.func @transform_0(%arg0: i32) -> (i32, i32, i32) {
    %c0_i32 = arith.constant 0 : i32
    %c0_i32_0 = arith.constant 0 : i32
    %c0_i32_1 = arith.constant 0 : i32
    return %arg0, %c0_i32, %c0_i32_0 : i32, i32, i32
  }
  func.func @transform_1(%arg0: i32) -> (i32, i32) {
    %c0_i32 = arith.constant 0 : i32
    %c0_i32_0 = arith.constant 0 : i32
    %c0_i32_1 = arith.constant 0 : i32
    return %c0_i32, %c0_i32_0 : i32, i32
  }
  func.func @transform_2(%arg0: i32) -> (i32, i32) {
    %c0_i32 = arith.constant 0 : i32
    %c0_i32_0 = arith.constant 0 : i32
    %c0_i32_1 = arith.constant 0 : i32
    return %c0_i32, %c0_i32_0 : i32, i32
  }
  func.func @transform_3(%arg0: i32) -> (i32, i32) {
    %c0_i32 = arith.constant 0 : i32
    %c0_i32_0 = arith.constant 0 : i32
    %c0_i32_1 = arith.constant 0 : i32
    return %c0_i32, %c0_i32_0 : i32, i32
  }
  func.func @transform_4(%arg0: i32) -> (i32, i32, i32) {
    %c0_i32 = arith.constant 0 : i32
    %c0_i32_0 = arith.constant 0 : i32
    %c0_i32_1 = arith.constant 0 : i32
    return %arg0, %c0_i32, %c0_i32_0 : i32, i32, i32
  }
}

</mosaic_0001>

<bundles_post_ra>
// kernel: segmenter_parallel_forward.1
= control target key start
LH: loop header
LB: loop body
LE: loop exit
PB: predicated region body
PF: predicated region fallthrough
CT: control target
= control target key end

     0   :  { %s1190_s17 = smov 0   ;;  %s1367_s0 = inlined_call_operand.vmem [shape: bf16[2,8,512], index: 0, kind: input, shape index: {}]   ;;  %s1368_s1 = inlined_call_operand.vmem [shape: bf16[128,72], index: 1, kind: input, shape index: {}]   ;;  %s1369_s2 = inlined_call_operand.vmem [shape: bf16[1,128], index: 2, kind: input, shape index: {}]   ;;  %s1370_s3 = inlined_call_operand.<no memory space> [shape: f32[1,1], index: 3, kind: input, shape index: {}]   ;;  %s1371_s4 = inlined_call_operand.vmem [shape: f32[2,1,384], index: 4, kind: output, shape index: {}]  }
   0x1   :  { %v9_v0 = vstv %s1370_s3 }
   0x2   :  { %10 = vst [vmem:[#allocation3] sm:$0x1] %v9_v0 }
   0x3 LB: > { %s988_s18 = sadd.s32 4294967295, %s1148_s17   ;;  %p992_p0 = scmp.ge.s32.totalorder %s1148_s17, 1  ;;  %s1148_s17 = sphi %s1190_s17, %s16_s17  }
   0x4   : > { %p164_p1 = scmp.lt.s32.totalorder %s1148_s17, 3 }
   0x6   : > { %p165_p2 = pnand %p992_p0, %p164_p1 }
   0x7   : > { %p189_p3 = scmp.lt.s32.totalorder (!%p165_p2), %s988_s18, 1  ;;  %s1150_s22 = smov (!%p165_p2), 90  }
   0x8   : > { %168 = sbr.rel (%p165_p2) target bundleno = 667 (0x29b), region = 36  ;;  %s1151_s23 = smov (!%p165_p2), 92  }
   0x9   : > { %s1152_s24 = smov (!%p165_p2), 91   ;;  %s1153_s25 = smov (!%p165_p2), 109  }
   0xa   : > { %s1154_s26 = smov (!%p165_p2), 108   ;;  %s1155_s27 = smov (!%p165_p2), 126  }
   0xb   : > { %s1156_s30 = smov (!%p165_p2), 110   ;;  %s1158_s5 = smov (!%p165_p2), 127  }
   0xd   : > { %s1373_s18 = smov (!%p189_p3, %s988_s18), 1  ;;  %v1215_v4 = vld [vmem:[%s1368_s1] sm:$0xff]   ;;  %vm494_vm0 = vcmask 588800   ;;  %v1157_v5 = vmov 0   ;;  %vm213_vm1 = vcmask 1043456   ;;  %vm341_vm2 = vcmask 736256  }
   0xe   : > { %s1037_s3 = sshll.u32 %s1373_s18, 4  ;;  %1070 = vmatprep.mubr.msk.bf16.mxu1 %vm494_vm0, %v1215_v4  ;;  %561 = vmatprep.mubr.bf16.mxu0 %v1157_v5  ;;  %vm305_vm3 = vcmask 752640   ;;  %vm323_vm4 = vcmask 744448   ;;  %vm269_vm5 = vcmask 891904   ;;  %vm287_vm6 = vcmask 883712  }
   0xf   : > { %s193_s21 = scalar_lea.vmem %s1367_s0, %s1037_s3  ;;  %1128 = vset.pattern.permute.xlu0 %v1157_v5  ;;  %vm233_vm7 = vcmask 1031168   ;;  %vm251_vm8 = vcmask 900096   ;;  %vm215_vm9 = vcmask 1039360   ;;  %vm1160_vm10 = vmmov 0  }
  0x10   : > { %v1204_v1 = vld [vmem:[%s193_s21] sm:$0xff]  ;;  %v331_v2 = vld [vmem:[%s193_s21 + $0x8] sm:$0xff] }
  0x11   : > { %334 = vrot.lane.b32.xlu0 %v1204_v1, %s1150_s22  ;;  %298 = vrot.lane.b32.xlu1 %v1204_v1, %s1151_s23  ;;  %v200_v3 = vld [vmem:[%s193_s21 + $0x8] sm:$0xf] }
  0x12   : > { %202 = vst [vmem:[#allocation2 + $0x8] sm:$0xf] %v200_v3 }
  0x15   : > { %336 = vrot.lane.b32.xlu0 %v331_v2, %s1150_s22  ;;  %300 = vrot.lane.b32.xlu1 %v331_v2, %s1151_s23  ;;  %s1107_s23 = smul.u32 3, %s1373_s18 }
  0x19   : > { %316 = vrot.lane.b32.xlu0 %v1204_v1, %s1152_s24  ;;  %318 = vrot.lane.b32.xlu1 %v331_v2, %s1152_s24 }
  0x1d   : > { %264 = vrot.lane.b32.xlu1 %v331_v2, %s1153_s25  ;;  %262 = vrot.lane.b32.xlu0 %v1204_v1, %s1153_s25 }
  0x21   : > { %282 = vrot.lane.b32.xlu1 %v331_v2, %s1154_s26  ;;  %280 = vrot.lane.b32.xlu0 %v1204_v1, %s1154_s26  ;;  %s197_s26 = scalar_lea.vmem %s1371_s4, %s1107_s23 }
  0x25   : > { %228 = vrot.lane.b32.xlu1 %v331_v2, %s1155_s27  ;;  %226 = vrot.lane.b32.xlu0 %v1204_v1, %s1155_s27 }
  0x29   : > { %246 = vrot.lane.b32.xlu1 %v331_v2, %s1156_s30  ;;  %244 = vrot.lane.b32.xlu0 %v1204_v1, %s1156_s30 }
  0x2d   : > { %209 = vrot.lane.b32.xlu1 %v331_v2, %s1158_s5  ;;  %207 = vrot.lane.b32.xlu0 %v1204_v1, %s1158_s5 }
  0x83   : > { %v335_v6 = vpop.permute.xlu0 %334  ;;  %v299_v7 = vpop.permute.xlu1 %298 }
  0x84   : > { %v338_v10 = vrot.slane %v335_v6, 4  ;;  %v302_v11 = vrot.slane %v299_v7, 4 }
  0x87   : > { %v337_v8 = vpop.permute.xlu0 %336  ;;  %v301_v9 = vpop.permute.xlu1 %300 }
  0x88   : > { %v339_v12 = vrot.slane %v337_v8, 4  ;;  %v303_v13 = vrot.slane %v301_v9, 4 }
  0x8a   : > { %v340_v14 = vsel %vm213_vm1, %v338_v10, %v339_v12  ;;  %v343_v15 = vsel %vm341_vm2, %v337_v8, %v339_v12  ;;  %v304_v16 = vsel %vm213_vm1, %v302_v11, %v303_v13  ;;  %v307_v17 = vsel %vm305_vm3, %v301_v9, %v303_v13 }
  0x8b   : > { %v342_v18 = vsel %vm341_vm2, %v335_v6, %v340_v14  ;;  %347 = vst [vmem:[#allocation2 + $0x68] sm:$0xf] %v343_v15  ;;  %v306_v19 = vsel %vm305_vm3, %v299_v7, %v304_v16  ;;  %311 = vst [vmem:[#allocation2 + $0x50] sm:$0xf] %v307_v17  ;;  %v317_v20 = vpop.permute.xlu0 %316  ;;  %v319_v21 = vpop.permute.xlu1 %318 }
  0x8c   : > { %v320_v22 = vrot.slane %v317_v20, 4  ;;  %v321_v23 = vrot.slane %v319_v21, 4  ;;  %v1016_v24 = vcombine.high %v342_v18, %v342_v18  ;;  %v1015_v25 = vcombine.low %v342_v18, %v342_v18  ;;  %v1135_v18 = vld [vmem:[%s1368_s1 + $0x8] sm:$0xff]  }
  0x8e   : > { %v322_v26 = vsel %vm213_vm1, %v320_v22, %v321_v23  ;;  %v325_v27 = vsel %vm323_vm4, %v319_v21, %v321_v23  ;;  %1018 = vmatprep.subr.msk.bf16.mxu0 %vm213_vm1, %v1016_v24  ;;  %v521_v28 = vsel %vm213_vm1, %v1015_v25, 0  ;;  %v1140_v21 = vld [vmem:[%s1368_s1 + $0x30] sm:$0xff]   ;;  %v1141_v22 = vld [vmem:[%s1368_s1 + $0x38] sm:$0xff]   ;;  %v1159_v23 = vmov 0.0   ;;  %v812_v24 = vld [vmem:[#allocation3] sm:$0x1] }
  0x8f   : > { %v324_v29 = vsel %vm323_vm4, %v317_v20, %v322_v26  ;;  %329 = vst [vmem:[#allocation2 + $0x5c] sm:$0xf] %v325_v27  ;;  %v265_v30 = vpop.permute.xlu1 %264  ;;  %v263_v31 = vpop.permute.xlu0 %262  ;;  %536 = vmatpush1.bf16.msra.mxu0 %v521_v28  ;;  %v1139_v20 = vld [vmem:[%s1368_s1 + $0x28] sm:$0xff]   ;;  %815 = vperm.xlu0 %1128, %v812_v24  }
  0x90   : > { %v267_v32 = vrot.slane %v265_v30, 4  ;;  %v266_v33 = vrot.slane %v263_v31, 4  ;;  %v1013_v34 = vcombine.high %v306_v19, %v324_v29  ;;  %v1012_v35 = vcombine.low %v306_v19, %v324_v29  ;;  %v1138_v19 = vld [vmem:[%s1368_s1 + $0x20] sm:$0xff]  }
  0x92   : > { %v271_v36 = vsel %vm269_vm5, %v265_v30, %v267_v32  ;;  %v268_v37 = vsel %vm213_vm1, %v266_v33, %v267_v32  ;;  %v1129_v38 = vld [vmem:[#allocation2 + $0x68] ss:$0 sps:$4 sm:$0xff]   ;;  %537 = vmatprep.subr.bf16.mxu0 %v1013_v34 }
  0x93   : > { %275 = vst [vmem:[#allocation2 + $0x38] sm:$0xf] %v271_v36  ;;  %v270_v39 = vsel %vm269_vm5, %v263_v31, %v268_v37  ;;  %v283_v40 = vpop.permute.xlu1 %282  ;;  %v281_v41 = vpop.permute.xlu0 %280  ;;  %538 = vmatpush1.bf16.msra.mxu0 %v1012_v35  ;;  %1106 = vmatprep.subr.msk.bf16.mxu1 %vm213_vm1, %v1129_v38  ;;  %v527_v44 = vsel %vm213_vm1, %v1129_v38, 0 }
  0x94   : > { %v285_v42 = vrot.slane %v283_v40, 4  ;;  %v284_v43 = vrot.slane %v281_v41, 4  ;;  %1061 = vmatpush3.bf16.msra.mxu1 %v527_v44 }
  0x96   : > { %v289_v45 = vsel %vm287_vm6, %v283_v40, %v285_v42  ;;  %v286_v46 = vsel %vm213_vm1, %v284_v43, %v285_v42  ;;  %v1130_v47 = vld [vmem:[#allocation2 + $0x50] ss:$12 sps:$4 sm:$0xff]  }
  0x97   : > { %293 = vst [vmem:[#allocation2 + $0x44] sm:$0xf] %v289_v45  ;;  %v288_v48 = vsel %vm287_vm6, %v281_v41, %v286_v46  ;;  %v229_v49 = vpop.permute.xlu1 %228  ;;  %v227_v50 = vpop.permute.xlu0 %226  ;;  %1062 = vmatprep.subr.bf16.mxu1 %v1130_v47 }
  0x98   : > { %v231_v51 = vrot.slane %v229_v49, 4  ;;  %v230_v52 = vrot.slane %v227_v50, 4  ;;  %v1010_v53 = vcombine.high %v270_v39, %v288_v48  ;;  %v1009_v54 = vcombine.low %v270_v39, %v288_v48  ;;  %1063 = vmatpush3.bf16.msra.mxu1 %v1130_v47 }
  0x9a   : > { %v235_v55 = vsel %vm233_vm7, %v229_v49, %v231_v51  ;;  %v232_v56 = vsel %vm213_vm1, %v230_v52, %v231_v51  ;;  %539 = vmatprep.subr.bf16.mxu0 %v1010_v53 }
  0x9b   : > { %239 = vst [vmem:[#allocation2 + $0x20] sm:$0xf] %v235_v55  ;;  %v234_v57 = vsel %vm233_vm7, %v227_v50, %v232_v56  ;;  %v247_v58 = vpop.permute.xlu1 %246  ;;  %v245_v59 = vpop.permute.xlu0 %244  ;;  %540 = vmatpush1.bf16.msra.mxu0 %v1009_v54 }
  0x9c   : > { %v249_v60 = vrot.slane %v247_v58, 4  ;;  %v248_v61 = vrot.slane %v245_v59, 4 }
  0x9e   : > { %v253_v62 = vsel %vm251_vm8, %v247_v58, %v249_v60  ;;  %v250_v63 = vsel %vm213_vm1, %v248_v61, %v249_v60  ;;  %v1131_v0 = vld [vmem:[#allocation2 + $0x38] ss:$12 sps:$4 sm:$0xff]  }
  0x9f   : > { %257 = vst [vmem:[#allocation2 + $0x2c] sm:$0xf] %v253_v62  ;;  %v252_v2 = vsel %vm251_vm8, %v245_v59, %v250_v63  ;;  %v210_v3 = vpop.permute.xlu1 %209  ;;  %v208_v6 = vpop.permute.xlu0 %207  ;;  %1064 = vmatprep.subr.bf16.mxu1 %v1131_v0 }
  0xa0   : > { %v212_v7 = vrot.slane %v210_v3, 4  ;;  %v211_v8 = vrot.slane %v208_v6, 4  ;;  %v1007_v9 = vcombine.high %v234_v57, %v252_v2  ;;  %v1006_v10 = vcombine.low %v234_v57, %v252_v2  ;;  %1065 = vmatpush3.bf16.msra.mxu1 %v1131_v0 }
  0xa2   : > { %v217_v11 = vsel %vm215_vm9, %v210_v3, %v212_v7  ;;  %v214_v12 = vsel %vm213_vm1, %v211_v8, %v212_v7  ;;  %541 = vmatprep.subr.bf16.mxu0 %v1007_v9 }
  0xa3   : > { %221 = vst [vmem:[#allocation2 + $0x14] sm:$0xf] %v217_v11  ;;  %v216_v13 = vsel %vm215_vm9, %v208_v6, %v214_v12  ;;  %542 = vmatpush1.bf16.msra.mxu0 %v1006_v10 }
  0xa4   : > { %v1004_v14 = vcombine.high %v1204_v1, %v216_v13  ;;  %v1003_v15 = vcombine.low %v1204_v1, %v216_v13  ;;  %v1136_v1 = vld [vmem:[%s1368_s1 + $0x10] sm:$0xff]  }
  0xa6   : > { %v1132_v16 = vld [vmem:[#allocation2 + $0x20] ss:$12 sps:$4 sm:$0xff]   ;;  %543 = vmatprep.subr.bf16.mxu0 %v1004_v14 }
  0xa7   : > { %544 = vmatpush1.bf16.msra.mxu0 %v1003_v15  ;;  %1066 = vmatprep.subr.bf16.mxu1 %v1132_v16 }
  0xa8   : > { %1067 = vmatpush3.bf16.msra.mxu1 %v1132_v16  ;;  %1086 = vmatprep.subr.bf16.mxu0 %v1159_v23 }
  0xaa   : > { %v1133_v17 = vld [vmem:[#allocation2 + $0x8] ss:$12 sps:$4 sm:$0xff]   ;;  %1019 = vmatmul.mubr.msk.bf16.vlgmr.msra.gmra.mxu0 %vm494_vm0, %v1215_v4  ;;  %v1137_v4 = vld [vmem:[%s1368_s1 + $0x18] sm:$0xff]  }
  0xab   : > { %571 = vmatprep.mubr.bf16.mxu0 %v1157_v5  ;;  %1068 = vmatprep.subr.bf16.mxu1 %v1133_v17 }
  0xac   : > { %1069 = vmatpush3.bf16.msra.mxu1 %v1133_v17 }
  0xaf   : > { %1071 = vmatmul.mubr.msk.bf16.vlgmr.msra.gmra.mxu1 %vm494_vm0, %v1135_v18 }
  0xb0   : > { %1074 = vmatprep.mubr.msk.bf16.mxu1 %vm494_vm0, %v1136_v1 }
  0xb2   : > { %1020 = vmatmul.mubr.msk.bf16.gmra.mxu0 %vm494_vm0, %v1135_v18 }
  0xb3   : > { %581 = vmatprep.mubr.bf16.mxu0 %v1157_v5 }
  0xb7   : > { %1075 = vmatmul.mubr.msk.bf16.gmra.mxu1 %vm494_vm0, %v1137_v4 }
  0xb8   : > { %1078 = vmatprep.mubr.msk.bf16.mxu1 %vm494_vm0, %v1138_v19 }
  0xba   : > { %1021 = vmatmul.mubr.msk.bf16.gmra.mxu0 %vm494_vm0, %v1136_v1 }
  0xbb   : > { %591 = vmatprep.mubr.bf16.mxu0 %v1157_v5 }
  0xbf   : > { %1079 = vmatmul.mubr.msk.bf16.gmra.mxu1 %vm494_vm0, %v1139_v20 }
  0xc0   : > { %1082 = vmatprep.mubr.msk.bf16.mxu1 %vm494_vm0, %v1140_v21 }
  0xc2   : > { %1022 = vmatmul.mubr.msk.bf16.gmra.mxu0 %vm494_vm0, %v1137_v4 }
  0xc3   : > { %601 = vmatprep.mubr.bf16.mxu0 %v1157_v5 }
  0xc7   : > { %1083 = vmatmul.mubr.msk.bf16.gmra.mxu1 %vm494_vm0, %v1141_v22 }
  0xc8   : > { %854 = vmatprep.mubr.bf16.mxu1 %v1157_v5 }
  0xca   : > { %1023 = vmatmul.mubr.msk.bf16.gmra.mxu0 %vm494_vm0, %v1138_v19 }
  0xcb   : > { %611 = vmatprep.mubr.bf16.mxu0 %v1157_v5 }
  0xd2   : > { %1024 = vmatmul.mubr.msk.bf16.gmra.mxu0 %vm494_vm0, %v1139_v20 }
  0xd3   : > { %621 = vmatprep.mubr.bf16.mxu0 %v1157_v5 }
  0xda   : > { %1025 = vmatmul.mubr.msk.bf16.gmra.mxu0 %vm494_vm0, %v1140_v21 }
  0xdb   : > { %631 = vmatprep.mubr.bf16.mxu0 %v1157_v5 }
  0xe2   : > { %1026 = vmatmul.mubr.msk.bf16.gmra.mxu0 %vm494_vm0, %v1141_v22 }
  0xe3   : > { %1102 = vmatprep.mubr.msk.bf16.mxu0 %vm1160_vm10, %v1159_v23 }
 0x16a   : > { %v563_v25 = vpop.f32.mrf.mxu0 }
 0x16b   : > { %v739_v28 = vmax.f32 %v563_v25, 0.0 }
 0x16c   : > { %v565_v26 = vpop.f32.mrf.mxu0 }
 0x16d   : > { %v740_v32 = vmax.f32 %v565_v26, 0.0 }
 0x16e   : > { %v567_v27 = vpop.f32.mrf.mxu0 }
 0x16f   : > { %v742_v29 = vmax.f32 %v567_v27, 0.0  ;;  %v1284_v30 = vpop.f32.mrf.mxu1 }
 0x170   : > { %v569_v31 = vpop.f32.mrf.mxu0 }
 0x171   : > { %v1286_v5 = vpack.c.bf16 %v742_v29, %v739_v28  ;;  %v743_v33 = vmax.f32 %v569_v31, 0.0  ;;  %v1288_v34 = vpop.f32.mrf.mxu1 }
 0x172   : > { %v573_v35 = vpop.f32.mrf.mxu0 }
 0x173   : > { %v1290_v36 = vpack.c.bf16 %v743_v33, %v740_v32  ;;  %v1292_v37 = vpop.f32.mrf.mxu1  ;;  %v745_v41 = vmax.f32 %v573_v35, 0.0 }
 0x174   : > { %v575_v38 = vpop.f32.mrf.mxu0 }
 0x175   : > { %v1294_v39 = vpop.f32.mrf.mxu1  ;;  %v746_v45 = vmax.f32 %v575_v38, 0.0 }
 0x176   : > { %v577_v40 = vpop.f32.mrf.mxu0 }
 0x177   : > { %v748_v42 = vmax.f32 %v577_v40, 0.0  ;;  %v1076_v43 = vpop.f32.mrf.mxu1 }
 0x178   : > { %v579_v44 = vpop.f32.mrf.mxu0  ;;  %v759_v27 = vmax.f32 %v1076_v43, 0.0 }
 0x179   : > { %v1296_v46 = vpack.c.bf16 %v748_v42, %v745_v41  ;;  %v749_v47 = vmax.f32 %v579_v44, 0.0  ;;  %v1298_v48 = vpop.f32.mrf.mxu1  ;;  %v747_v41 = vmax.f32 %v1284_v30, 0.0  ;;  %v750_v42 = vmax.f32 %v1292_v37, 0.0 }
 0x17a   : > { %v1300_v49 = vpop.f32.mrf.mxu0  ;;  %v753_v32 = vmax.f32 %v1298_v48, 0.0 }
 0x17b   : > { %v1302_v50 = vpack.c.bf16 %v749_v47, %v746_v45  ;;  %v1077_v51 = vpop.f32.mrf.mxu1  ;;  %v741_v47 = vmax.f32 %v1288_v34, 0.0  ;;  %v792_v48 = vpack.c.bf16 %v750_v42, %v747_v41  ;;  %v811_v34 = vld [vmem:[%s1369_s2] sm:$0x1] }
 0x17c   : > { %v1304_v52 = vpop.f32.mrf.mxu0  ;;  %v762_v28 = vmax.f32 %v1077_v51, 0.0  ;;  %v744_v51 = vmax.f32 %v1294_v39, 0.0 }
 0x17d   : > { %v695_v53 = vpop.f32.mrf.mxu1 }
 0x17e   : > { %v1306_v54 = vpop.f32.mrf.mxu0  ;;  %v798_v33 = vpack.c.bf16 %v762_v28, %v759_v27  ;;  %v756_v35 = vmax.f32 %v695_v53, 0.0  ;;  %v789_v37 = vpack.c.bf16 %v744_v51, %v741_v47  ;;  %v751_v28 = vmax.f32 %v1300_v49, 0.0 }
 0x17f   : > { %v1080_v55 = vpop.f32.mrf.mxu1 }
 0x180   : > { %v1308_v56 = vpop.f32.mrf.mxu0  ;;  %v771_v16 = vmax.f32 %v1080_v55, 0.0  ;;  %v795_v43 = vpack.c.bf16 %v756_v35, %v753_v32 }
 0x181   : > { %v708_v57 = vpop.f32.mrf.mxu1 }
 0x182   : > { %v1310_v58 = vpop.f32.mrf.mxu0  ;;  %v765_v19 = vmax.f32 %v708_v57, 0.0 }
 0x183   : > { %v1081_v59 = vpop.f32.mrf.mxu1 }
 0x184   : > { %v1312_v60 = vpop.f32.mrf.mxu0  ;;  %v774_v17 = vmax.f32 %v1081_v59, 0.0 }
 0x185   : > { %v711_v61 = vpop.f32.mrf.mxu1 }
 0x186   : > { %v1314_v62 = vpop.f32.mrf.mxu0  ;;  %v804_v20 = vpack.c.bf16 %v774_v17, %v771_v16  ;;  %v768_v21 = vmax.f32 %v711_v61, 0.0 }
 0x187   : > { %v1084_v63 = vpop.f32.mrf.mxu1 }
 0x188   : > { %v1316_v0 = vpop.f32.mrf.mxu0  ;;  %v783_v6 = vmax.f32 %v1084_v63, 0.0  ;;  %v801_v25 = vpack.c.bf16 %v768_v21, %v765_v19 }
 0x189   : > { %v724_v2 = vpop.f32.mrf.mxu1  ;;  %v761_v21 = vmax.f32 %v1316_v0, 0.0  ;;  %v754_v0 = vmax.f32 %v1306_v54, 0.0 }
 0x18a   : > { %v1318_v3 = vpop.f32.mrf.mxu0  ;;  %v777_v9 = vmax.f32 %v724_v2, 0.0 }
 0x18b   : > { %v1085_v7 = vpop.f32.mrf.mxu1 }
 0x18c   : > { %v1320_v8 = vpop.f32.mrf.mxu0  ;;  %v786_v10 = vmax.f32 %v1085_v7, 0.0 }
 0x18d   : > { %v727_v11 = vpop.f32.mrf.mxu1 }
 0x18e   : > { %v1322_v12 = vpop.f32.mrf.mxu0  ;;  %v810_v13 = vpack.c.bf16 %v786_v10, %v783_v6  ;;  %v780_v14 = vmax.f32 %v727_v11, 0.0 }
 0x18f   : > { %v766_v19 = vmax.f32 %v1322_v12, 0.0  ;;  %v752_v12 = vmax.f32 %v1304_v52, 0.0 }
 0x190   : > { %v1324_v15 = vpop.f32.mrf.mxu0  ;;  %v807_v18 = vpack.c.bf16 %v780_v14, %v777_v9  ;;  %1087 = vmatpush3.bf16.msra.mxu0 %v810_v13 }
 0x191   : > { %1088 = vmatprep.subr.bf16.mxu0 %v1159_v23 }
 0x192   : > { %v1327_v1 = vpop.f32.mrf.mxu0 }
 0x193   : > { %v769_v17 = vmax.f32 %v1327_v1, 0.0  ;;  %v755_v1 = vmax.f32 %v1308_v56, 0.0 }
 0x194   : > { %v615_v4 = vpop.f32.mrf.mxu0  ;;  %1089 = vmatpush3.bf16.msra.mxu0 %v807_v18  ;;  %v764_v18 = vmax.f32 %v1320_v8, 0.0  ;;  %v757_v8 = vmax.f32 %v1310_v58, 0.0 }
 0x195   : > { %1090 = vmatprep.subr.bf16.mxu0 %v1159_v23  ;;  %v770_v11 = vmax.f32 %v615_v4, 0.0  ;;  %v763_v4 = vmax.f32 %v1318_v3, 0.0  ;;  %v794_v3 = vpack.c.bf16 %v755_v1, %v752_v12 }
 0x196   : > { %v617_v22 = vpop.f32.mrf.mxu0 }
 0x197   : > { %v772_v13 = vmax.f32 %v617_v22, 0.0  ;;  %v758_v22 = vmax.f32 %v1312_v60, 0.0  ;;  %v793_v60 = vpack.c.bf16 %v754_v0, %v751_v28 }
 0x198   : > { %v619_v24 = vpop.f32.mrf.mxu0  ;;  %1091 = vmatpush3.bf16.msra.mxu0 %v804_v20 }
 0x199   : > { %1092 = vmatprep.subr.bf16.mxu0 %v1159_v23  ;;  %v773_v9 = vmax.f32 %v619_v24, 0.0  ;;  %v802_v20 = vpack.c.bf16 %v772_v13, %v769_v17 }
 0x19a   : > { %v623_v26 = vpop.f32.mrf.mxu0 }
 0x19b   : > { %v775_v39 = vmax.f32 %v623_v26, 0.0  ;;  %v803_v16 = vpack.c.bf16 %v773_v9, %v770_v11  ;;  %v797_v26 = vpack.c.bf16 %v761_v21, %v758_v22 }
 0x19c   : > { %v625_v29 = vpop.f32.mrf.mxu0  ;;  %1093 = vmatpush3.bf16.msra.mxu0 %v801_v25  ;;  %v799_v25 = vpack.c.bf16 %v766_v19, %v763_v4 }
 0x19d   : > { %1094 = vmatprep.subr.bf16.mxu0 %v1159_v23  ;;  %v776_v63 = vmax.f32 %v625_v29, 0.0 }
 0x19e   : > { %v627_v31 = vpop.f32.mrf.mxu0 }
 0x19f   : > { %v778_v6 = vmax.f32 %v627_v31, 0.0  ;;  %v1161_v31 = vmov 1966171168  }
 0x1a0   : > { %v629_v38 = vpop.f32.mrf.mxu0  ;;  %1095 = vmatpush3.bf16.msra.mxu0 %v798_v33  ;;  %v908_v32 = vunpack.c.l.s4 %v1161_v31  ;;  %v816_v33 = vpop.permute.xlu0 %815 }
 0x1a1   : > { %1096 = vmatprep.subr.bf16.mxu0 %v1159_v23  ;;  %v779_v57 = vmax.f32 %v629_v38, 0.0  ;;  %v805_v14 = vpack.c.bf16 %v778_v6, %v775_v39 }
 0x1a2   : > { %v633_v40 = vpop.f32.mrf.mxu0  ;;  %v909_v35 = vunpack.c.0.s8 %v908_v32 }
 0x1a3   : > { %v781_v30 = vmax.f32 %v633_v40, 0.0  ;;  %v806_v10 = vpack.c.bf16 %v779_v57, %v776_v63 }
 0x1a4   : > { %v635_v44 = vpop.f32.mrf.mxu0  ;;  %1097 = vmatpush3.bf16.msra.mxu0 %v795_v43 }
 0x1a5   : > { %1098 = vmatprep.subr.bf16.mxu0 %v1159_v23  ;;  %v782_v59 = vmax.f32 %v635_v44, 0.0 }
 0x1a6   : > { %v637_v45 = vpop.f32.mrf.mxu0 }
 0x1a7   : > { %v784_v53 = vmax.f32 %v637_v45, 0.0 }
 0x1a8   : > { %v639_v55 = vpop.f32.mrf.mxu0  ;;  %1099 = vmatpush3.bf16.msra.mxu0 %v792_v48 }
 0x1a9   : > { %v785_v61 = vmax.f32 %v639_v55, 0.0  ;;  %1100 = vmatprep.subr.bf16.mxu0 %v1159_v23  ;;  %v808_v7 = vpack.c.bf16 %v784_v53, %v781_v30  ;;  %v767_v23 = vmax.f32 %v1324_v15, 0.0  ;;  %v760_v15 = vmax.f32 %v1314_v62, 0.0 }
 0x1aa   : > { %v818_v62 = vlaneseq }
 0x1ab   : > { %v809_v2 = vpack.c.bf16 %v785_v61, %v782_v59  ;;  %v800_v24 = vpack.c.bf16 %v767_v23, %v764_v18  ;;  %v796_v27 = vpack.c.bf16 %v760_v15, %v757_v8 }
 0x1ac   : > { %1101 = vmatpush3.bf16.msra.mxu0 %v789_v37  ;;  %v819_v49 = vshrl.u32 %v818_v62, 7  ;;  %vm932_vm11 = vcmp.lt.s32.totalorder %v818_v62, 384 }
 0x1ad   : > { %822 = vmatprep.subr.bf16.mxu1 %v809_v2 }
 0x1ae   : > { %823 = vmatpush1.bf16.msra.mxu1 %v808_v7  ;;  %v820_v29 = vsub.s32 0, %v819_v49  ;;  %v912_v40 = vsub.s32 %v909_v35, %v819_v49 }
 0x1af   : > { %824 = vmatprep.subr.bf16.mxu1 %v806_v10  ;;  %1103 = vmatmul.mubr.bf16.vlgmr.msra.gmra.mxu0 %v811_v34 }
 0x1b2   : > { %825 = vmatpush1.bf16.msra.mxu1 %v805_v14 }
 0x1b3   : > { %826 = vmatprep.subr.bf16.mxu1 %v803_v16 }
 0x1b6   : > { %827 = vmatpush1.bf16.msra.mxu1 %v802_v20 }
 0x1b7   : > { %828 = vmatprep.subr.bf16.mxu1 %v800_v24 }
 0x1ba   : > { %829 = vmatpush1.bf16.msra.mxu1 %v799_v25 }
 0x1bb   : > { %830 = vmatprep.subr.bf16.mxu1 %v797_v26 }
 0x1be   : > { %831 = vmatpush1.bf16.msra.mxu1 %v796_v27 }
 0x1bf   : > { %832 = vmatprep.subr.bf16.mxu1 %v794_v3 }
 0x1c2   : > { %833 = vmatpush1.bf16.msra.mxu1 %v793_v60 }
 0x1c3   : > { %834 = vmatprep.subr.bf16.mxu1 %v1302_v50  ;;  %v821_v50 = vrot.slane %v816_v33, %v820_v29 }
 0x1c6   : > { %835 = vmatpush1.bf16.msra.mxu1 %v1296_v46 }
 0x1c7   : > { %836 = vmatprep.subr.bf16.mxu1 %v1290_v36 }
 0x1ca   : > { %837 = vmatpush1.bf16.msra.mxu1 %v1286_v5 }
 0x1cd   : > { %855 = vmatmul.mubr.bf16.vlgmr.msra.gmra.mxu1 %v811_v34 }
 0x26f   : > { %v897_v52 = vpop.f32.mrf.mxu0 }
 0x270   : > { %v898_v36 = vadd.f32 %v897_v52, %v821_v50 }
 0x271   : > { %v1104_v56 = vpop.f32.mrf.mxu0 }
 0x272   : > { %v920_v45 = vrot.slane %v898_v36, %v912_v40 }
 0x273   : > { %v900_v54 = vpop.f32.mrf.mxu0 }
 0x275   : > { %v1105_v58 = vpop.f32.mrf.mxu0 }
 0x28d   : > { %v856_v38 = vpop.f32.mrf.mxu1 }
 0x28e   : > { %v857_v41 = vadd.f32 %v856_v38, %v821_v50 }
 0x28f   : > { %v858_v46 = vpop.f32.mrf.mxu1 }
 0x290   : > { %v859_v5 = vadd.f32 %v858_v46, %v821_v50 }
 0x291   : > { %v860_v42 = vpop.f32.mrf.mxu1 }
 0x292   : > { %v906_v43 = vcombine.low %v857_v41, %v859_v5 }
 0x293   : > { %v861_v44 = vpop.f32.mrf.mxu1 }
 0x294   : > { %v913_v47 = vrot.slane %v906_v43, %v912_v40 }
 0x296   : > { %v921_v48 = vcombine.low %v913_v47, %v920_v45 }
 0x298   : > { %v928_v51 = vrot.slane %v921_v48, %v912_v40 }
 0x29a   : > { %934 = vst.msk [vmem:[%s197_s26] sm:$0x7] %vm932_vm11, %v928_v51 }
 0x29b PF: > { %s16_s17 = sadd.s32 1, %s1148_s17  }
 0x29c   : > { %p13_p4 = scmp.ge.s32.totalorder %s16_s17, 4  }
 0x29e   :  { %15 = sbr.rel (!%p13_p4) target bundleno = 3 (0x3), region = 66 }

</bundles_post_ra>
